<compile_context>
chip_gen: v5e
topology: v5e:2x2
jax: 0.10.0
libtpu: 0.0.40
codegen_flags: <defaults>
</compile_context>

<pallas_src>
import jax
import jax.numpy as jnp
from jax.experimental import pallas as pl
from jax.experimental.pallas import tpu as pltpu


def _rmsnorm_kernel(x_ref, scale_ref, o_ref):
    # x_ref block: (1, R, C) -- one batch element's full slab, lane-dense when
    # possible (C == 128).
    x = x_ref[0]                                    # (R, C) f32
    n = x.shape[0] * x.shape[1]                     # static
    ss = jnp.sum(x * x)                             # scalar sum of squares
    # ff_rms = sqrt(ss / n)  =>  1 / ff_rms = rsqrt(ss / n)   (EUP op)
    inv = jax.lax.rsqrt(ss * (1.0 / float(n)))
    # TODO(synk): the torch forward uses no epsilon; an all-zero slab -> inf,
    # same as the reference module.
    o_ref[0] = scale_ref[...] * x * inv


def rmsnorm(x, scale):
    """x: (B, M, D) f32.  scale: (context_window, D) f32 (torch `self.scale`)."""
    b, m, d = x.shape
    scale_md = scale[:m, :]                         # self.scale[:seq_len, :]
    n = m * d

    if n % 128 == 0:
        # Lane-dense path: flatten each (M, D) slab row-major to (R, 128).
        r = n // 128
        x_in = x.reshape(b, r, 128)
        s_in = scale_md.reshape(r, 128)
        out = pl.pallas_call(
            _rmsnorm_kernel,
            grid=(b,),
            in_specs=[pl.BlockSpec((1, r, 128), lambda i: (i, 0, 0)),
                      pl.BlockSpec((r, 128), lambda i: (0, 0))],
            out_specs=pl.BlockSpec((1, r, 128), lambda i: (i, 0, 0)),
            out_shape=jax.ShapeDtypeStruct((b, r, 128), jnp.float32),
            compiler_params=pltpu.CompilerParams(
                dimension_semantics=("parallel",)),
        )(x_in, s_in)
        return out.reshape(b, m, d)

    # Fallback: full (M, D) blocks (block equals full trailing array dims, so
    # the (8,128) rule is satisfied for odd sizes).
    return pl.pallas_call(
        _rmsnorm_kernel,
        grid=(b,),
        in_specs=[pl.BlockSpec((1, m, d), lambda i: (i, 0, 0)),
                  pl.BlockSpec((m, d), lambda i: (0, 0))],
        out_specs=pl.BlockSpec((1, m, d), lambda i: (i, 0, 0)),
        out_shape=jax.ShapeDtypeStruct((b, m, d), jnp.float32),
        compiler_params=pltpu.CompilerParams(
            dimension_semantics=("parallel",)),
    )(x, scale_md)


def rmsnorm_ref(x, scale):
    """Pure-JAX mirror of the PyTorch forward (correctness check only)."""
    b, m, d = x.shape
    ff_rms = jnp.linalg.norm(x.reshape(b, -1), axis=-1) * float(m * d) ** -0.5
    raw = x / ff_rms[:, None, None]
    return scale[:m, :][None] * raw


if __name__ == "__main__":
    B, M, D = 2, 8, 32
    CONTEXT_WINDOW = 16

    key = jax.random.PRNGKey(0)
    kx, ks = jax.random.split(key)
    x = jax.random.normal(kx, (B, M, D), dtype=jnp.float32)
    # torch initializes scale to ones; perturb it so the test exercises it.
    scale = jnp.ones((CONTEXT_WINDOW, D), jnp.float32) + \
        0.1 * jax.random.normal(ks, (CONTEXT_WINDOW, D), dtype=jnp.float32)

    out = rmsnorm(x, scale)
    out = jax.block_until_ready(out)

    ref = rmsnorm_ref(x, scale)
    assert out.shape == (B, M, D)
    assert bool(jnp.all(jnp.isfinite(out)))
    assert bool(jnp.allclose(out, ref, atol=1e-5, rtol=1e-5))
    print("KERNEL_OK")
</pallas_src>

<mosaic_0001>
module attributes {stable_mosaic.version = 11 : i64} {
  func.func @_rmsnorm_kernel(%arg0: i32, %arg1: memref<1x2x128xf32, #tpu.memory_space<vmem>>, %arg2: memref<2x128xf32, #tpu.memory_space<vmem>>, %arg3: memref<1x2x128xf32, #tpu.memory_space<vmem>>) attributes {dimension_semantics = [#tpu.dimension_semantics<parallel>], iteration_bounds = array<i64: 2>, scalar_prefetch = 0 : i64, scratch_operands = 0 : i64, tpu.core_type = #tpu.core_type<tc>, window_params = [{transform_indices = @transform_0, window_bounds = array<i64: 1, 2, 128>}, {pipeline_mode = #tpu.pipeline_mode<synchronous>, transform_indices = @transform_1, window_bounds = array<i64: 2, 128>}, {transform_indices = @transform_2, window_bounds = array<i64: 1, 2, 128>}]} {
    %c0 = arith.constant 0 : index
    %c0_0 = arith.constant 0 : index
    %c0_1 = arith.constant 0 : index
    %0 = vector.load %arg1[%c0, %c0_0, %c0_1] : memref<1x2x128xf32, #tpu.memory_space<vmem>>, vector<1x2x128xf32>
    %1 = vector.shape_cast %0 : vector<1x2x128xf32> to vector<2x128xf32>
    %2 = arith.mulf %1, %1 : vector<2x128xf32>
    %3 = vector.shape_cast %2 : vector<2x128xf32> to vector<1x2x128xf32>
    %cst = arith.constant dense<0.000000e+00> : vector<1xf32>
    %4 = vector.multi_reduction <add>, %3, %cst [1, 2] : vector<1x2x128xf32> to vector<1xf32>
    %5 = vector.shape_cast %4 : vector<1xf32> to vector<1x1x1xf32>
    %6 = vector.extract %5[0, 0, 0] : f32 from vector<1x1x1xf32>
    %cst_2 = arith.constant 3.906250e-03 : f32
    %7 = arith.mulf %6, %cst_2 : f32
    %8 = math.rsqrt %7 : f32
    %c0_3 = arith.constant 0 : index
    %c0_4 = arith.constant 0 : index
    %9 = vector.load %arg2[%c0_3, %c0_4] : memref<2x128xf32, #tpu.memory_space<vmem>>, vector<2x128xf32>
    %10 = arith.mulf %9, %1 : vector<2x128xf32>
    %11 = vector.broadcast %8 : f32 to vector<2x128xf32>
    %12 = arith.mulf %10, %11 : vector<2x128xf32>
    %c0_5 = arith.constant 0 : index
    %c0_6 = arith.constant 0 : index
    %c0_7 = arith.constant 0 : index
    %13 = vector.load %arg3[%c0_5, %c0_6, %c0_7] : memref<1x2x128xf32, #tpu.memory_space<vmem>>, vector<1x2x128xf32>
    %14 = vector.shape_cast %13 : vector<1x2x128xf32> to vector<2x128xf32>
    %15 = vector.shape_cast %12 : vector<2x128xf32> to vector<1x2x128xf32>
    tpu.vector_store %arg3[%c0_5, %c0_6, %c0_7], %15 {strides = array<i32>} : memref<1x2x128xf32, #tpu.memory_space<vmem>>, vector<1x2x128xf32>,
    return
  }
  func.func @transform_0(%arg0: i32) -> (i32, i32, i32) {
    %c0_i32 = arith.constant 0 : i32
    %c0_i32_0 = arith.constant 0 : i32
    %c0_i32_1 = arith.constant 0 : i32
    return %arg0, %c0_i32, %c0_i32_0 : i32, i32, i32
  }
  func.func @transform_1(%arg0: i32) -> (i32, i32) {
    %c0_i32 = arith.constant 0 : i32
    %c0_i32_0 = arith.constant 0 : i32
    %c0_i32_1 = arith.constant 0 : i32
    return %c0_i32, %c0_i32_0 : i32, i32
  }
  func.func @transform_2(%arg0: i32) -> (i32, i32, i32) {
    %c0_i32 = arith.constant 0 : i32
    %c0_i32_0 = arith.constant 0 : i32
    %c0_i32_1 = arith.constant 0 : i32
    return %arg0, %c0_i32, %c0_i32_0 : i32, i32, i32
  }
}

</mosaic_0001>

<bundles_post_ra>
// kernel: tpu_custom_call.1
= control target key start
LH: loop header
LB: loop body
LE: loop exit
PB: predicated region body
PF: predicated region fallthrough
CT: control target
= control target key end

     0   :  { %7 = vsyncpa [#allocation3], 0  ;;  %s670_s0 = inlined_call_operand.hbm [shape: f32[2,2,128], index: 0, kind: input, shape index: {}]   ;;  %s671_s1 = inlined_call_operand.hbm [shape: f32[2,128], index: 1, kind: input, shape index: {}]   ;;  %s672_s2 = inlined_call_operand.hbm [shape: f32[2,2,128], index: 2, kind: output, shape index: {}]  }
   0x1   :  { %9 = vsyncpa [#allocation3 + $0x1], 0 }
   0x2   :  { %10 = vsyncpa [#allocation6], 0 }
   0x3   :  { %11 = vsyncpa [#allocation4], 0 }
   0x4   :  { %13 = vsyncpa [#allocation4 + $0x1], 0  ;;  %s528_s9 = smov 0   ;;  %s530_s10 = smov 0  }
   0x5   :  { %s532_s11 = smov 0   ;;  %s534_s12 = smov 0  }
   0x6 LB: > { %s549_s13 = sadd.s32 4294967295, %s510_s12   ;;  %s303_s14 = sadd.s32 4294967294, %s510_s12   ;;  %s510_s12 = sphi %s534_s12, %s682_s12   ;;  %s506_s11 = sphi %s532_s11, %s681_s11   ;;  %s502_s10 = sphi %s530_s10, %s680_s10   ;;  %s498_s9 = sphi %s528_s9, %s679_s9  }
   0x7   : > { %p39_p0 = scmp.ne.s32.totalorder %s502_s10, %s498_s9  ;;  %p40_p1 = scmp.eq.s32.totalorder %s549_s13, 0 }
   0x8   : > { %p84_p2 = scmp.eq.s32.totalorder %s549_s13, 1  ;;  %p90_p3 = scmp.eq.s32.totalorder %s303_s14, 1 }
   0x9   : > { %p558_p4 = por %p40_p1, %p39_p0  ;;  %p304_p5 = scmp.ge.s32.totalorder %s510_s12, 1 }
   0xa   : > { %p563_p6 = por %p90_p3, %p39_p0  ;;  %p97_p7 = scmp.lt.s32.totalorder %s510_s12, 3 }
   0xb   : > { %s109_s19 = sshll.u32 %s671_s1, 4  ;;  %s512_s21 = smov [#allocation5]   ;;  %s110_s19 = int_to_ptr.hbm [resolvable:$true] %s109_s19 }
   0xc   : > { %p571_p8 = pnand %p304_p5, %p97_p7  ;;  %s111_s22 = sshll.u32 %s512_s21, 4  ;;  %s112_s22 = int_to_ptr.vmem [resolvable:$true] %s111_s22 }
   0xd   : > { %s581_s23 = sadd.s32 1, %s510_s12   ;;  %s26_s24 = sadd.s32 1, %s506_s11 }
   0xe   : > { %p329_p10 = pneg %p571_p8  ;;  %s23_s25 = ssub.s32 %s510_s12, %s581_s23 }
   0xf   : > { %p24_p12 = scmp.eq.s32.totalorder %s23_s25, 0  ;;  %p33_p13 = scmp.ne.s32.totalorder %s506_s11, %s502_s10 }
  0x10   : > { %p330_p11 = pnand %p329_p10, %p40_p1  ;;  %p34_p0 = scmp.eq.s32.totalorder %s510_s12, 0 }
  0x11   : > { %s590_s26 = scalar_select %p24_p12, %s506_s11, %s26_s24  }
  0x12   : > { %332 = dma.hbm_to_vmem [thread:$0]  (!%p330_p11), %s110_s19, 32, %s112_s22, [#allocation6]  }
  0x13   : > { %p594_p3 = por %p84_p2, %p33_p13  ;;  %p342_p5 = scmp.lt.s32.totalorder %s510_s12, 2 }
  0x14   : > { %s122_s28 = sand.u32 1, %s506_s11   ;;  %s308_s29 = sshll.u32 %s510_s12, 1 }
  0x15   : > { %p35_p7 = por %p34_p0, %p33_p13  ;;  %s307_s30 = sshll.u32 %s122_s28, 1 }
  0x16   : > { %s130_s5 = scalar_lea.hbm %s670_s0, %s308_s29  ;;  %s126_s7 = scalar_lea.vmem [#allocation2], %s307_s30 }
  0x17   : > { %s132_s6 = sshll.u32 %s130_s5, 4  ;;  %s134_s8 = sshll.u32 %s126_s7, 4  ;;  %s133_s6 = int_to_ptr.hbm [resolvable:$true] %s132_s6  ;;  %s135_s8 = int_to_ptr.vmem [resolvable:$true] %s134_s8 }
  0x18   : > { %p604_p10 = pnand %p342_p5, %p35_p7  ;;  %s123_s17 = scalar_lea.sflag [#allocation3], %s122_s28 }
  0x19   : > { %s410_s18 = sshra.s32 %s133_s6, 4  ;;  %s417_s24 = scalar_lea.hbm %s670_s0, 4  ;;  %s411_s18 = int_to_ptr.hbm [resolvable:$true] %s410_s18 }
  0x1a   : > { %s412_s19 = scalar_lea.hbm %s411_s18, 2  ;;  %p414_p11 = pneg %p604_p10 }
  0x1b   : > { %p413_p2 = scmp.ne.s32.totalorder %s411_s18, %s412_s19  ;;  %p418_p0 = scmp.lt.s32.totalorder %s411_s18, %s670_s0 }
  0x1c   : > { %p419_p5 = scmp.lt.s32.totalorder %s417_s24, %s412_s19 }
  0x1d   : > { %p415_p12 = pnand %p414_p11, %p413_p2 }
  0x1e   : > { %p420_p7 = por %p419_p5, %p418_p0 }
  0x1f   : > { %p416_p13 = pneg %p415_p12 }
  0x21   : > { %p421_p9 = pnand %p420_p7, %p416_p13 }
  0x23   : > { %424 = shalt.err (!%p421_p9)
}
  0x24   : > { %336 = dma.hbm_to_vmem [thread:$0]  (!%p604_p10), %s133_s6, 32, %s135_s8, %s123_s17  }
  0x25   : > { %143 = sbr.rel (%p571_p8) target bundleno = 304 (0x130), region = 28  ;;  %s621_s28 = sand.u32 (!%p571_p8), 1, %s502_s10  }
  0x26   : > { %s310_s30 = sshll.u32 (!%p571_p8), %s621_s28, 1  ;;  %s146_s3 = scalar_lea.sflag (!%p571_p8), [#allocation3], %s621_s28 }
  0x27   : > { %s149_s4 = scalar_lea.vmem (!%p571_p8), [#allocation2], %s310_s30 }
  0x2a   : > { %485 = dma.done.wait (%p558_p4), %s146_s3, 32  }
  0x2b   : > { %487 = vsyncadd (%p558_p4), %s146_s3, 4294967264 }
  0x2c   : > { %489 = dma.done.wait (%p40_p1), [#allocation6], 32  }
  0x2d   : > { %491 = vsyncadd (%p40_p1), [#allocation6], 4294967264  ;;  %v176_v0 = vld [vmem:[%s149_s4] sm:$0x3]  ;;  %vm178_vm0 = vcmask 1041408   ;;  %s314_s5 = sshll.u32 %s549_s13, 1 }
  0x2e   : > { %v177_v1 = vmul.f32 %v176_v0, %v176_v0  ;;  %v202_v18 = vld [vmem:[#allocation5] sm:$0x3]  ;;  %s218_s8 = scalar_lea.hbm %s672_s2, %s314_s5  ;;  %s175_s14 = scalar_lea.vmem [#allocation7], %s310_s30 }
  0x2f   : > { %v203_v19 = vmul.f32 %v202_v18, %v176_v0  ;;  %s220_s17 = sshll.u32 %s175_s14, 4  ;;  %s222_s18 = sshll.u32 %s218_s8, 4  ;;  %s221_s17 = int_to_ptr.vmem [resolvable:$true] %s220_s17  ;;  %s223_s18 = int_to_ptr.hbm [resolvable:$true] %s222_s18 }
  0x30   : > { %v179_v2 = vsel %vm178_vm0, %v177_v1, 0.0  ;;  %s208_s21 = scalar_lea.sflag [#allocation4], %s621_s28  ;;  %s454_s22 = sshra.s32 %s223_s18, 4  ;;  %s455_s22 = int_to_ptr.hbm [resolvable:$true] %s454_s22 }
  0x31   : > { %180 = vadd.xlane.f32.xlu0 %v179_v2  ;;  %s456_s13 = scalar_lea.hbm %s455_s22, 2  ;;  %s460_s29 = scalar_lea.hbm %s672_s2, 4 }
  0x32   : > { %p457_p1 = scmp.ne.s32.totalorder %s455_s22, %s456_s13  ;;  %p461_p9 = scmp.lt.s32.totalorder %s455_s22, %s672_s2 }
  0x33   : > { %p462_p10 = scmp.lt.s32.totalorder %s460_s29, %s456_s13 }
  0x34   : > { %p458_p4 = pnand %p457_p1, %p594_p3 }
  0x35   : > { %p463_p2 = por %p462_p10, %p461_p9 }
  0x36   : > { %p459_p8 = pneg %p458_p4 }
  0x38   : > { %p464_p11 = pnand %p463_p2, %p459_p8 }
  0xa4   : > { %v181_v3 = vpop.xlane.xlu0 %180 }
  0xa5   : > { %v182_v4 = vrot.slane %v181_v3, 4 }
  0xa7   : > { %v183_v5 = vadd.f32 %v182_v4, %v181_v3 }
  0xa9   : > { %v184_v6 = vrot.slane %v183_v5, 2 }
  0xab   : > { %v185_v7 = vadd.f32 %v184_v6, %v183_v5 }
  0xad   : > { %v186_v8 = vrot.slane %v185_v7, 1 }
  0xaf   : > { %v187_v9 = vadd.f32 %v186_v8, %v185_v7 }
  0xb1   : > { %317 = vpush %v187_v9 }
  0xe2   : > { %s318_s15 = spop %317 }
  0xe3   : > { %s189_s20 = smul.f32 0.00390625, %s318_s15 }
  0xe5   : > { %v190_v10 = vstv %s189_s20 }
  0xe6   : > { %378 = vrsqrt.f32 %v190_v10  ;;  %vm197_vm2 = vweird.f32 %v190_v10 }
  0xec   : > { %v379_v11 = vpop.eup %378 }
  0xed   : > { %v192_v12 = vmul.f32 %v379_v11, %v190_v10  ;;  %vm198_vm1 = vweird.f32 %v379_v11 }
  0xee   : > { %vm199_vm3 = vmor %vm197_vm2, %vm198_vm1 }
  0xef   : > { %v193_v13 = vmul.f32 %v379_v11, %v192_v12 }
  0xf1   : > { %v194_v14 = vmul.f32 0.5, %v193_v13 }
  0xf3   : > { %v195_v15 = vsub.f32 1.5, %v194_v14 }
  0xf5   : > { %v196_v16 = vmul.f32 %v379_v11, %v195_v15 }
  0xf7   : > { %v200_v17 = vsel %vm199_vm3, %v379_v11, %v196_v16 }
  0xf8   : > { %319 = vpush %v200_v17 }
 0x129   : > { %s320_s19 = spop %319 }
 0x12a   : > { %v204_v20 = vstv %s320_s19 }
 0x12b   : > { %v205_v21 = vmul.f32 %v204_v20, %v203_v19 }
 0x12d   : > { %206 = vst [vmem:[%s175_s14] sm:$0x3] %v205_v21 }
 0x12e   : > { %467 = shalt.err (!%p464_p11)
}
 0x12f   : > { %327 = dma.vmem_to_hbm [thread:$0]  (%p594_p3), %s221_s17, 32, %s223_s18, %s208_s21  }
 0x130 PF: > { %s234_s28 = sand.u32 1, %s498_s9   ;;  %p678_p12 = scmp.ge.s32.totalorder %s510_s12, 2 }
 0x131   : > { %s235_s4 = scalar_lea.sflag [#allocation4], %s234_s28 }
 0x132   : > { %p338_p13 = pnand %p678_p12, %p563_p6 }
 0x134   : > { %p339_p0 = pneg %p338_p13 }
 0x136   : > { %493 = dma.done.wait (%p339_p0), %s235_s4, 32  }
 0x137   : > { %495 = vsyncadd (%p339_p0), %s235_s4, 4294967264  ;;  %p16_p5 = scmp.ge.s32.totalorder %s581_s23, 4   ;;  %s679_s9 = smov %s502_s10 }
 0x138   : > { %s680_s10 = smov %s506_s11  ;;  %s681_s11 = smov %s590_s26 }
 0x139   : > { %s682_s12 = smov %s581_s23  ;;  %18 = sbr.rel (!%p16_p5) target bundleno = 6 (0x6), region = 77 }
 0x13e   :  { %241 = vsyncpa [#allocation3], 1 }
 0x13f   :  { %243 = vsyncpa [#allocation3 + $0x1], 1 }
 0x140   :  { %244 = vsyncpa [#allocation6], 1 }
 0x141   :  { %245 = vsyncpa [#allocation4], 1 }
 0x142   :  { %247 = vsyncpa [#allocation4 + $0x1], 1 }

</bundles_post_ra>
